<compile_context>
chip_gen: v7x
topology: tpu7x:2x2x1
jax: 0.10.0
libtpu: 0.0.40
codegen_flags: <defaults>
</compile_context>

<pallas_src>
import functools

import jax
import jax.numpy as jnp
from jax import lax
from jax.experimental import pallas as pl
from jax.experimental.pallas import tpu as pltpu


def _mml_activation(x, leak):
    # 'MML' (Michaelis-Menten-like) activation from activationFunctions:
    #   x < 0        -> leak * x
    #   0 <= x <= .5 -> x
    #   x > 0.5      -> 1 - 0.25 / x     (approx EUP reciprocal inside kernel)
    x = jnp.where(x < 0.0, leak * x, x)
    hi = x > 0.5
    x_safe = jnp.where(hi, x, 1.0)
    return jnp.where(hi, 1.0 - 0.25 * pl.reciprocal(x_safe, approx=True), x)


def _bionet_kernel(at_ref, bin_ref, out_ref, *, iterations, leak,
                   check_every, tol):
    """Fixed-point solve xhat = MML(xhat @ A^T + bIn) with true early exit.

    Layout: [B_pad, N_pad] (batch on sublanes, nodes on the 128 lanes).
    at_ref holds A^T (A^T[source, target]) so one MXU pass carries the whole
    contraction; everything is VMEM-resident across the serial recurrence.
    """
    A_T = at_ref[...]          # [Np, Np]
    b_in = bin_ref[...]        # [Bp, Np]

    def step(x):
        return _mml_activation(
            jnp.dot(x, A_T, preferred_element_type=jnp.float32) + b_in, leak)

    n_blocks = iterations // check_every
    rem = iterations - n_blocks * check_every

    def cond(carry):
        k, _, keep_going = carry
        return jnp.logical_and(k < n_blocks, keep_going > 0)

    def body(carry):
        k, x, _ = carry
        x_block_start = x
        # `check_every` dependent steps, Python-unrolled so the scheduler can
        # overlap MXU result-pop latency with the activation VPU work.
        for _ in range(check_every):
            x = step(x)
        # Convergence test once per block (off the per-iteration critical
        # path); only active past the original loop's warm-up window (i > 41).
        steps_done = (k + 1) * check_every
        delta = jnp.sum(jnp.abs(x - x_block_start))
        converged = jnp.logical_and(steps_done > 41, delta < tol)
        keep_going = jnp.where(converged, jnp.int32(0), jnp.int32(1))
        return k + 1, x, keep_going

    x0 = jnp.zeros_like(b_in)
    _, xhat, keep_going = lax.while_loop(
        cond, body, (jnp.int32(0), x0, jnp.int32(1)))

    # Remainder steps (iterations % check_every), gated on convergence; this
    # path is not even traced when check_every divides iterations.
    if rem > 0:
        active = keep_going > 0
        for _ in range(rem):
            xhat = jnp.where(active, step(xhat), xhat)

    out_ref[...] = xhat.astype(out_ref.dtype)


def bionet_forward(A_T_padded, b_in_padded, *, iterations, leak,
                   check_every=10, tol=1e-6):
    Np = A_T_padded.shape[0]
    Bp = b_in_padded.shape[0]
    kernel = functools.partial(_bionet_kernel, iterations=iterations,
                               leak=leak, check_every=check_every, tol=tol)
    return pl.pallas_call(
        kernel,
        out_shape=jax.ShapeDtypeStruct((Bp, Np), jnp.float32),
        grid=(1,),
        in_specs=[
            pl.BlockSpec((Np, Np), lambda i: (0, 0)),   # A^T, resident in VMEM
            pl.BlockSpec((Bp, Np), lambda i: (0, 0)),   # bIn
        ],
        out_specs=pl.BlockSpec((Bp, Np), lambda i: (0, 0)),
        compiler_params=pltpu.CompilerParams(
            dimension_semantics=("arbitrary",)),
    )(A_T_padded, b_in_padded)


def build_model_params(key, N, n_edges, n_in, n_out,
                       input_amplitude=1.2, projection_factor=1.0):
    """Deterministic synthetic stand-in for networkList / modeOfAction / weights."""
    k_edges, k_w = jax.random.split(key, 2)

    # networkList: unique (target, source) edges drawn from a permutation.
    perm = jax.random.permutation(k_edges, N * N)
    edge_idx = perm[:n_edges]
    targets = edge_idx // N          # networkList[0]
    sources = edge_idx % N           # networkList[1]

    # modeOfAction: alternate activating / inhibiting edges.
    moa_inhib = (jnp.arange(n_edges) % 2) == 1

    # initializeWeights(): 0.1 + 0.1*rand, negated for inhibiting edges.
    w = 0.1 + 0.1 * jax.random.uniform(k_w, (n_edges,), dtype=jnp.float32)
    w = jnp.where(moa_inhib, -w, w)

    # bias = 0.001, except 1.0 for nodes whose incoming weights are all < 0.
    pos_in = jax.ops.segment_sum((w >= 0).astype(jnp.int32), targets, N)
    num_in = jax.ops.segment_sum(jnp.ones((n_edges,), jnp.int32), targets, N)
    bias = jnp.where((num_in > 0) & (pos_in == 0), 1.0, 0.001).astype(jnp.float32)

    # Dense A with A[target, source] = weight (csr duplicates would sum; edges unique).
    A_dense = jnp.zeros((N, N), jnp.float32).at[targets, sources].add(w)

    # projectInput / projectOutput node orderings and weights.
    in_order = jnp.arange(n_in)                 # first n_in nodes are inputs
    out_order = jnp.arange(N - n_out, N)        # last n_out nodes are outputs
    in_w = input_amplitude * jnp.ones((n_in,), jnp.float32)
    out_w = projection_factor * jnp.ones((n_out,), jnp.float32)

    return dict(A=A_dense, bias=bias, in_order=in_order, out_order=out_order,
                in_w=in_w, out_w=out_w, N=N)


def _round_up(x, m):
    return ((x + m - 1) // m) * m


def model_forward(params, X, *, iterations=150, leak=0.01):
    B = X.shape[0]
    N = params["N"]
    N_pad = _round_up(max(N, 128), 128)   # nodes on lanes -> lane-dense
    B_pad = _round_up(max(B, 8), 8)       # batch on sublanes -> full vregs

    # projectInput: curIn[:, nodeOrder] = weights * X
    fullX = jnp.zeros((B, N), jnp.float32).at[:, params["in_order"]].set(
        params["in_w"] * X)
    # bionet drive in [B, N] layout.
    b_in = fullX + params["bias"][None, :]

    # Pad to (B_pad, N_pad); padded rows/cols stay exactly 0 through MML.
    b_in_p = jnp.zeros((B_pad, N_pad), jnp.float32).at[:B, :N].set(b_in)
    A_T_p = jnp.zeros((N_pad, N_pad), jnp.float32).at[:N, :N].set(params["A"].T)

    xhat_p = bionet_forward(A_T_p, b_in_p, iterations=iterations, leak=leak)
    fullY = xhat_p[:B, :N]                               # [B, N]
    # projectOutput: weights * x[:, nodeOrder]
    Yhat = params["out_w"] * fullY[:, params["out_order"]]
    return Yhat, fullY


def _reference_forward(params, X, *, iterations=150, leak=0.01):
    """Plain-JAX reference (full iterations, exact division) for validation."""
    B = X.shape[0]
    N = params["N"]
    fullX = jnp.zeros((B, N), jnp.float32).at[:, params["in_order"]].set(
        params["in_w"] * X)
    b_in = fullX.T + params["bias"][:, None]      # [N, B], original layout
    A = params["A"]

    def act(x):
        x = jnp.where(x < 0.0, leak * x, x)
        xs = jnp.where(x > 0.5, x, 1.0)
        return jnp.where(x > 0.5, 1.0 - 0.25 / xs, x)

    def body(i, xhat):
        return act(A @ xhat + b_in)

    xhat = lax.fori_loop(0, iterations, body, jnp.zeros_like(b_in))
    fullY = xhat.T
    return params["out_w"] * fullY[:, params["out_order"]], fullY


if __name__ == "__main__":
    N = 48        # number of network nodes (len(nodeNames))
    n_edges = 96  # networkList.shape[1]
    n_in = 6      # len(inName)
    n_out = 8     # len(outName)
    B = 4         # batch

    key = jax.random.PRNGKey(0)
    k_params, k_x = jax.random.split(key)
    params = build_model_params(k_params, N, n_edges, n_in, n_out)

    X = jax.random.uniform(k_x, (B, n_in), dtype=jnp.float32)

    Yhat, fullY = model_forward(params, X, iterations=150, leak=0.01)
    jax.block_until_ready((Yhat, fullY))

    assert Yhat.shape == (B, n_out) and fullY.shape == (B, N)
    assert bool(jnp.all(jnp.isfinite(Yhat))) and bool(jnp.all(jnp.isfinite(fullY)))

    # Validate the Pallas fixed point against a plain-JAX full-iteration
    # reference (loose tol: kernel uses approx EUP reciprocal + early exit).
    Yref, fullYref = _reference_forward(params, X, iterations=150, leak=0.01)
    max_diff = float(jnp.max(jnp.abs(fullY - fullYref)))
    assert max_diff < 2e-2, f"mismatch vs plain-JAX reference: {max_diff}"

    print("KERNEL_OK")
</pallas_src>

<mosaic_0001>
module attributes {stable_mosaic.version = 11 : i64} {
  func.func @_bionet_kernel(%arg0: i32, %arg1: memref<128x128xf32, #tpu.memory_space<vmem>>, %arg2: memref<8x128xf32, #tpu.memory_space<vmem>>, %arg3: memref<8x128xf32, #tpu.memory_space<vmem>>) attributes {dimension_semantics = [#tpu.dimension_semantics<arbitrary>], iteration_bounds = array<i64: 1>, scalar_prefetch = 0 : i64, scratch_operands = 0 : i64, tpu.core_type = #tpu.core_type<tc>, window_params = [{pipeline_mode = #tpu.pipeline_mode<synchronous>, transform_indices = @transform_0, window_bounds = array<i64: 128, 128>}, {pipeline_mode = #tpu.pipeline_mode<synchronous>, transform_indices = @transform_1, window_bounds = array<i64: 8, 128>}, {pipeline_mode = #tpu.pipeline_mode<synchronous>, transform_indices = @transform_2, window_bounds = array<i64: 8, 128>}]} {
    %c0 = arith.constant 0 : index
    %c0_0 = arith.constant 0 : index
    %0 = vector.load %arg1[%c0, %c0_0] : memref<128x128xf32, #tpu.memory_space<vmem>>, vector<128x128xf32>
    %c0_1 = arith.constant 0 : index
    %c0_2 = arith.constant 0 : index
    %1 = vector.load %arg2[%c0_1, %c0_2] : memref<8x128xf32, #tpu.memory_space<vmem>>, vector<8x128xf32>
    %cst = arith.constant 0.000000e+00 : f32
    %2 = vector.broadcast %cst : f32 to vector<8x128xf32>
    %c0_i32 = arith.constant 0 : i32
    %c1_i32 = arith.constant 1 : i32
    %3:3 = scf.while (%arg4 = %c0_i32, %arg5 = %2, %arg6 = %c1_i32) : (i32, vector<8x128xf32>, i32) -> (i32, vector<8x128xf32>, i32) {
      %c15_i32 = arith.constant 15 : i32
      %5 = arith.cmpi slt, %arg4, %c15_i32 : i32
      %c0_i32_5 = arith.constant 0 : i32
      %6 = arith.cmpi sgt, %arg6, %c0_i32_5 : i32
      %7 = arith.andi %5, %6 : i1
      scf.condition(%7) %arg4, %arg5, %arg6 : i32, vector<8x128xf32>, i32
    } do {
    ^bb0(%arg4: i32, %arg5: vector<8x128xf32>, %arg6: i32):
      %cst_5 = arith.constant dense<0.000000e+00> : vector<8x128xf32>
      %5 = tpu.matmul %arg5, %0, %cst_5 {dimension_numbers = #tpu.dot_dimension_numbers<[1], [0], [0], [1], [0, 0, 1, 1], [], []>} : vector<8x128xf32>, vector<128x128xf32>, vector<8x128xf32> -> vector<8x128xf32>
      %6 = arith.addf %5, %1 : vector<8x128xf32>
      %cst_6 = arith.constant 0.000000e+00 : f32
      %7 = vector.broadcast %cst_6 : f32 to vector<8x128xf32>
      %8 = arith.cmpf olt, %6, %7 : vector<8x128xf32>
      %cst_7 = arith.constant 0.00999999977 : f32
      %9 = vector.broadcast %cst_7 : f32 to vector<8x128xf32>
      %10 = arith.mulf %9, %6 : vector<8x128xf32>
      %11 = arith.select %8, %10, %6 : vector<8x128xi1>, vector<8x128xf32>
      %cst_8 = arith.constant 5.000000e-01 : f32
      %12 = vector.broadcast %cst_8 : f32 to vector<8x128xf32>
      %13 = arith.cmpf ogt, %11, %12 : vector<8x128xf32>
      %cst_9 = arith.constant 1.000000e+00 : f32
      %14 = vector.broadcast %cst_9 : f32 to vector<8x128xf32>
      %15 = arith.select %13, %11, %14 : vector<8x128xi1>, vector<8x128xf32>
      %16 = tpu.reciprocal %15 {approx = true} : vector<8x128xf32> -> vector<8x128xf32>
      %cst_10 = arith.constant 2.500000e-01 : f32
      %17 = vector.broadcast %cst_10 : f32 to vector<8x128xf32>
      %18 = arith.mulf %17, %16 : vector<8x128xf32>
      %cst_11 = arith.constant 1.000000e+00 : f32
      %19 = vector.broadcast %cst_11 : f32 to vector<8x128xf32>
      %20 = arith.subf %19, %18 : vector<8x128xf32>
      %21 = arith.select %13, %20, %11 : vector<8x128xi1>, vector<8x128xf32>
      %cst_12 = arith.constant dense<0.000000e+00> : vector<8x128xf32>
      %22 = tpu.matmul %21, %0, %cst_12 {dimension_numbers = #tpu.dot_dimension_numbers<[1], [0], [0], [1], [0, 0, 1, 1], [], []>} : vector<8x128xf32>, vector<128x128xf32>, vector<8x128xf32> -> vector<8x128xf32>
      %23 = arith.addf %22, %1 : vector<8x128xf32>
      %cst_13 = arith.constant 0.000000e+00 : f32
      %24 = vector.broadcast %cst_13 : f32 to vector<8x128xf32>
      %25 = arith.cmpf olt, %23, %24 : vector<8x128xf32>
      %cst_14 = arith.constant 0.00999999977 : f32
      %26 = vector.broadcast %cst_14 : f32 to vector<8x128xf32>
      %27 = arith.mulf %26, %23 : vector<8x128xf32>
      %28 = arith.select %25, %27, %23 : vector<8x128xi1>, vector<8x128xf32>
      %cst_15 = arith.constant 5.000000e-01 : f32
      %29 = vector.broadcast %cst_15 : f32 to vector<8x128xf32>
      %30 = arith.cmpf ogt, %28, %29 : vector<8x128xf32>
      %cst_16 = arith.constant 1.000000e+00 : f32
      %31 = vector.broadcast %cst_16 : f32 to vector<8x128xf32>
      %32 = arith.select %30, %28, %31 : vector<8x128xi1>, vector<8x128xf32>
      %33 = tpu.reciprocal %32 {approx = true} : vector<8x128xf32> -> vector<8x128xf32>
      %cst_17 = arith.constant 2.500000e-01 : f32
      %34 = vector.broadcast %cst_17 : f32 to vector<8x128xf32>
      %35 = arith.mulf %34, %33 : vector<8x128xf32>
      %cst_18 = arith.constant 1.000000e+00 : f32
      %36 = vector.broadcast %cst_18 : f32 to vector<8x128xf32>
      %37 = arith.subf %36, %35 : vector<8x128xf32>
      %38 = arith.select %30, %37, %28 : vector<8x128xi1>, vector<8x128xf32>
      %cst_19 = arith.constant dense<0.000000e+00> : vector<8x128xf32>
      %39 = tpu.matmul %38, %0, %cst_19 {dimension_numbers = #tpu.dot_dimension_numbers<[1], [0], [0], [1], [0, 0, 1, 1], [], []>} : vector<8x128xf32>, vector<128x128xf32>, vector<8x128xf32> -> vector<8x128xf32>
      %40 = arith.addf %39, %1 : vector<8x128xf32>
      %cst_20 = arith.constant 0.000000e+00 : f32
      %41 = vector.broadcast %cst_20 : f32 to vector<8x128xf32>
      %42 = arith.cmpf olt, %40, %41 : vector<8x128xf32>
      %cst_21 = arith.constant 0.00999999977 : f32
      %43 = vector.broadcast %cst_21 : f32 to vector<8x128xf32>
      %44 = arith.mulf %43, %40 : vector<8x128xf32>
      %45 = arith.select %42, %44, %40 : vector<8x128xi1>, vector<8x128xf32>
      %cst_22 = arith.constant 5.000000e-01 : f32
      %46 = vector.broadcast %cst_22 : f32 to vector<8x128xf32>
      %47 = arith.cmpf ogt, %45, %46 : vector<8x128xf32>
      %cst_23 = arith.constant 1.000000e+00 : f32
      %48 = vector.broadcast %cst_23 : f32 to vector<8x128xf32>
      %49 = arith.select %47, %45, %48 : vector<8x128xi1>, vector<8x128xf32>
      %50 = tpu.reciprocal %49 {approx = true} : vector<8x128xf32> -> vector<8x128xf32>
      %cst_24 = arith.constant 2.500000e-01 : f32
      %51 = vector.broadcast %cst_24 : f32 to vector<8x128xf32>
      %52 = arith.mulf %51, %50 : vector<8x128xf32>
      %cst_25 = arith.constant 1.000000e+00 : f32
      %53 = vector.broadcast %cst_25 : f32 to vector<8x128xf32>
      %54 = arith.subf %53, %52 : vector<8x128xf32>
      %55 = arith.select %47, %54, %45 : vector<8x128xi1>, vector<8x128xf32>
      %cst_26 = arith.constant dense<0.000000e+00> : vector<8x128xf32>
      %56 = tpu.matmul %55, %0, %cst_26 {dimension_numbers = #tpu.dot_dimension_numbers<[1], [0], [0], [1], [0, 0, 1, 1], [], []>} : vector<8x128xf32>, vector<128x128xf32>, vector<8x128xf32> -> vector<8x128xf32>
      %57 = arith.addf %56, %1 : vector<8x128xf32>
      %cst_27 = arith.constant 0.000000e+00 : f32
      %58 = vector.broadcast %cst_27 : f32 to vector<8x128xf32>
      %59 = arith.cmpf olt, %57, %58 : vector<8x128xf32>
      %cst_28 = arith.constant 0.00999999977 : f32
      %60 = vector.broadcast %cst_28 : f32 to vector<8x128xf32>
      %61 = arith.mulf %60, %57 : vector<8x128xf32>
      %62 = arith.select %59, %61, %57 : vector<8x128xi1>, vector<8x128xf32>
      %cst_29 = arith.constant 5.000000e-01 : f32
      %63 = vector.broadcast %cst_29 : f32 to vector<8x128xf32>
      %64 = arith.cmpf ogt, %62, %63 : vector<8x128xf32>
      %cst_30 = arith.constant 1.000000e+00 : f32
      %65 = vector.broadcast %cst_30 : f32 to vector<8x128xf32>
      %66 = arith.select %64, %62, %65 : vector<8x128xi1>, vector<8x128xf32>
      %67 = tpu.reciprocal %66 {approx = true} : vector<8x128xf32> -> vector<8x128xf32>
      %cst_31 = arith.constant 2.500000e-01 : f32
      %68 = vector.broadcast %cst_31 : f32 to vector<8x128xf32>
      %69 = arith.mulf %68, %67 : vector<8x128xf32>
      %cst_32 = arith.constant 1.000000e+00 : f32
      %70 = vector.broadcast %cst_32 : f32 to vector<8x128xf32>
      %71 = arith.subf %70, %69 : vector<8x128xf32>
      %72 = arith.select %64, %71, %62 : vector<8x128xi1>, vector<8x128xf32>
      %cst_33 = arith.constant dense<0.000000e+00> : vector<8x128xf32>
      %73 = tpu.matmul %72, %0, %cst_33 {dimension_numbers = #tpu.dot_dimension_numbers<[1], [0], [0], [1], [0, 0, 1, 1], [], []>} : vector<8x128xf32>, vector<128x128xf32>, vector<8x128xf32> -> vector<8x128xf32>
      %74 = arith.addf %73, %1 : vector<8x128xf32>
      %cst_34 = arith.constant 0.000000e+00 : f32
      %75 = vector.broadcast %cst_34 : f32 to vector<8x128xf32>
      %76 = arith.cmpf olt, %74, %75 : vector<8x128xf32>
      %cst_35 = arith.constant 0.00999999977 : f32
      %77 = vector.broadcast %cst_35 : f32 to vector<8x128xf32>
      %78 = arith.mulf %77, %74 : vector<8x128xf32>
      %79 = arith.select %76, %78, %74 : vector<8x128xi1>, vector<8x128xf32>
      %cst_36 = arith.constant 5.000000e-01 : f32
      %80 = vector.broadcast %cst_36 : f32 to vector<8x128xf32>
      %81 = arith.cmpf ogt, %79, %80 : vector<8x128xf32>
      %cst_37 = arith.constant 1.000000e+00 : f32
      %82 = vector.broadcast %cst_37 : f32 to vector<8x128xf32>
      %83 = arith.select %81, %79, %82 : vector<8x128xi1>, vector<8x128xf32>
      %84 = tpu.reciprocal %83 {approx = true} : vector<8x128xf32> -> vector<8x128xf32>
      %cst_38 = arith.constant 2.500000e-01 : f32
      %85 = vector.broadcast %cst_38 : f32 to vector<8x128xf32>
      %86 = arith.mulf %85, %84 : vector<8x128xf32>
      %cst_39 = arith.constant 1.000000e+00 : f32
      %87 = vector.broadcast %cst_39 : f32 to vector<8x128xf32>
      %88 = arith.subf %87, %86 : vector<8x128xf32>
      %89 = arith.select %81, %88, %79 : vector<8x128xi1>, vector<8x128xf32>
      %cst_40 = arith.constant dense<0.000000e+00> : vector<8x128xf32>
      %90 = tpu.matmul %89, %0, %cst_40 {dimension_numbers = #tpu.dot_dimension_numbers<[1], [0], [0], [1], [0, 0, 1, 1], [], []>} : vector<8x128xf32>, vector<128x128xf32>, vector<8x128xf32> -> vector<8x128xf32>
      %91 = arith.addf %90, %1 : vector<8x128xf32>
      %cst_41 = arith.constant 0.000000e+00 : f32
      %92 = vector.broadcast %cst_41 : f32 to vector<8x128xf32>
      %93 = arith.cmpf olt, %91, %92 : vector<8x128xf32>
      %cst_42 = arith.constant 0.00999999977 : f32
      %94 = vector.broadcast %cst_42 : f32 to vector<8x128xf32>
      %95 = arith.mulf %94, %91 : vector<8x128xf32>
      %96 = arith.select %93, %95, %91 : vector<8x128xi1>, vector<8x128xf32>
      %cst_43 = arith.constant 5.000000e-01 : f32
      %97 = vector.broadcast %cst_43 : f32 to vector<8x128xf32>
      %98 = arith.cmpf ogt, %96, %97 : vector<8x128xf32>
      %cst_44 = arith.constant 1.000000e+00 : f32
      %99 = vector.broadcast %cst_44 : f32 to vector<8x128xf32>
      %100 = arith.select %98, %96, %99 : vector<8x128xi1>, vector<8x128xf32>
      %101 = tpu.reciprocal %100 {approx = true} : vector<8x128xf32> -> vector<8x128xf32>
      %cst_45 = arith.constant 2.500000e-01 : f32
      %102 = vector.broadcast %cst_45 : f32 to vector<8x128xf32>
      %103 = arith.mulf %102, %101 : vector<8x128xf32>
      %cst_46 = arith.constant 1.000000e+00 : f32
      %104 = vector.broadcast %cst_46 : f32 to vector<8x128xf32>
      %105 = arith.subf %104, %103 : vector<8x128xf32>
      %106 = arith.select %98, %105, %96 : vector<8x128xi1>, vector<8x128xf32>
      %cst_47 = arith.constant dense<0.000000e+00> : vector<8x128xf32>
      %107 = tpu.matmul %106, %0, %cst_47 {dimension_numbers = #tpu.dot_dimension_numbers<[1], [0], [0], [1], [0, 0, 1, 1], [], []>} : vector<8x128xf32>, vector<128x128xf32>, vector<8x128xf32> -> vector<8x128xf32>
      %108 = arith.addf %107, %1 : vector<8x128xf32>
      %cst_48 = arith.constant 0.000000e+00 : f32
      %109 = vector.broadcast %cst_48 : f32 to vector<8x128xf32>
      %110 = arith.cmpf olt, %108, %109 : vector<8x128xf32>
      %cst_49 = arith.constant 0.00999999977 : f32
      %111 = vector.broadcast %cst_49 : f32 to vector<8x128xf32>
      %112 = arith.mulf %111, %108 : vector<8x128xf32>
      %113 = arith.select %110, %112, %108 : vector<8x128xi1>, vector<8x128xf32>
      %cst_50 = arith.constant 5.000000e-01 : f32
      %114 = vector.broadcast %cst_50 : f32 to vector<8x128xf32>
      %115 = arith.cmpf ogt, %113, %114 : vector<8x128xf32>
      %cst_51 = arith.constant 1.000000e+00 : f32
      %116 = vector.broadcast %cst_51 : f32 to vector<8x128xf32>
      %117 = arith.select %115, %113, %116 : vector<8x128xi1>, vector<8x128xf32>
      %118 = tpu.reciprocal %117 {approx = true} : vector<8x128xf32> -> vector<8x128xf32>
      %cst_52 = arith.constant 2.500000e-01 : f32
      %119 = vector.broadcast %cst_52 : f32 to vector<8x128xf32>
      %120 = arith.mulf %119, %118 : vector<8x128xf32>
      %cst_53 = arith.constant 1.000000e+00 : f32
      %121 = vector.broadcast %cst_53 : f32 to vector<8x128xf32>
      %122 = arith.subf %121, %120 : vector<8x128xf32>
      %123 = arith.select %115, %122, %113 : vector<8x128xi1>, vector<8x128xf32>
      %cst_54 = arith.constant dense<0.000000e+00> : vector<8x128xf32>
      %124 = tpu.matmul %123, %0, %cst_54 {dimension_numbers = #tpu.dot_dimension_numbers<[1], [0], [0], [1], [0, 0, 1, 1], [], []>} : vector<8x128xf32>, vector<128x128xf32>, vector<8x128xf32> -> vector<8x128xf32>
      %125 = arith.addf %124, %1 : vector<8x128xf32>
      %cst_55 = arith.constant 0.000000e+00 : f32
      %126 = vector.broadcast %cst_55 : f32 to vector<8x128xf32>
      %127 = arith.cmpf olt, %125, %126 : vector<8x128xf32>
      %cst_56 = arith.constant 0.00999999977 : f32
      %128 = vector.broadcast %cst_56 : f32 to vector<8x128xf32>
      %129 = arith.mulf %128, %125 : vector<8x128xf32>
      %130 = arith.select %127, %129, %125 : vector<8x128xi1>, vector<8x128xf32>
      %cst_57 = arith.constant 5.000000e-01 : f32
      %131 = vector.broadcast %cst_57 : f32 to vector<8x128xf32>
      %132 = arith.cmpf ogt, %130, %131 : vector<8x128xf32>
      %cst_58 = arith.constant 1.000000e+00 : f32
      %133 = vector.broadcast %cst_58 : f32 to vector<8x128xf32>
      %134 = arith.select %132, %130, %133 : vector<8x128xi1>, vector<8x128xf32>
      %135 = tpu.reciprocal %134 {approx = true} : vector<8x128xf32> -> vector<8x128xf32>
      %cst_59 = arith.constant 2.500000e-01 : f32
      %136 = vector.broadcast %cst_59 : f32 to vector<8x128xf32>
      %137 = arith.mulf %136, %135 : vector<8x128xf32>
      %cst_60 = arith.constant 1.000000e+00 : f32
      %138 = vector.broadcast %cst_60 : f32 to vector<8x128xf32>
      %139 = arith.subf %138, %137 : vector<8x128xf32>
      %140 = arith.select %132, %139, %130 : vector<8x128xi1>, vector<8x128xf32>
      %cst_61 = arith.constant dense<0.000000e+00> : vector<8x128xf32>
      %141 = tpu.matmul %140, %0, %cst_61 {dimension_numbers = #tpu.dot_dimension_numbers<[1], [0], [0], [1], [0, 0, 1, 1], [], []>} : vector<8x128xf32>, vector<128x128xf32>, vector<8x128xf32> -> vector<8x128xf32>
      %142 = arith.addf %141, %1 : vector<8x128xf32>
      %cst_62 = arith.constant 0.000000e+00 : f32
      %143 = vector.broadcast %cst_62 : f32 to vector<8x128xf32>
      %144 = arith.cmpf olt, %142, %143 : vector<8x128xf32>
      %cst_63 = arith.constant 0.00999999977 : f32
      %145 = vector.broadcast %cst_63 : f32 to vector<8x128xf32>
      %146 = arith.mulf %145, %142 : vector<8x128xf32>
      %147 = arith.select %144, %146, %142 : vector<8x128xi1>, vector<8x128xf32>
      %cst_64 = arith.constant 5.000000e-01 : f32
      %148 = vector.broadcast %cst_64 : f32 to vector<8x128xf32>
      %149 = arith.cmpf ogt, %147, %148 : vector<8x128xf32>
      %cst_65 = arith.constant 1.000000e+00 : f32
      %150 = vector.broadcast %cst_65 : f32 to vector<8x128xf32>
      %151 = arith.select %149, %147, %150 : vector<8x128xi1>, vector<8x128xf32>
      %152 = tpu.reciprocal %151 {approx = true} : vector<8x128xf32> -> vector<8x128xf32>
      %cst_66 = arith.constant 2.500000e-01 : f32
      %153 = vector.broadcast %cst_66 : f32 to vector<8x128xf32>
      %154 = arith.mulf %153, %152 : vector<8x128xf32>
      %cst_67 = arith.constant 1.000000e+00 : f32
      %155 = vector.broadcast %cst_67 : f32 to vector<8x128xf32>
      %156 = arith.subf %155, %154 : vector<8x128xf32>
      %157 = arith.select %149, %156, %147 : vector<8x128xi1>, vector<8x128xf32>
      %cst_68 = arith.constant dense<0.000000e+00> : vector<8x128xf32>
      %158 = tpu.matmul %157, %0, %cst_68 {dimension_numbers = #tpu.dot_dimension_numbers<[1], [0], [0], [1], [0, 0, 1, 1], [], []>} : vector<8x128xf32>, vector<128x128xf32>, vector<8x128xf32> -> vector<8x128xf32>
      %159 = arith.addf %158, %1 : vector<8x128xf32>
      %cst_69 = arith.constant 0.000000e+00 : f32
      %160 = vector.broadcast %cst_69 : f32 to vector<8x128xf32>
      %161 = arith.cmpf olt, %159, %160 : vector<8x128xf32>
      %cst_70 = arith.constant 0.00999999977 : f32
      %162 = vector.broadcast %cst_70 : f32 to vector<8x128xf32>
      %163 = arith.mulf %162, %159 : vector<8x128xf32>
      %164 = arith.select %161, %163, %159 : vector<8x128xi1>, vector<8x128xf32>
      %cst_71 = arith.constant 5.000000e-01 : f32
      %165 = vector.broadcast %cst_71 : f32 to vector<8x128xf32>
      %166 = arith.cmpf ogt, %164, %165 : vector<8x128xf32>
      %cst_72 = arith.constant 1.000000e+00 : f32
      %167 = vector.broadcast %cst_72 : f32 to vector<8x128xf32>
      %168 = arith.select %166, %164, %167 : vector<8x128xi1>, vector<8x128xf32>
      %169 = tpu.reciprocal %168 {approx = true} : vector<8x128xf32> -> vector<8x128xf32>
      %cst_73 = arith.constant 2.500000e-01 : f32
      %170 = vector.broadcast %cst_73 : f32 to vector<8x128xf32>
      %171 = arith.mulf %170, %169 : vector<8x128xf32>
      %cst_74 = arith.constant 1.000000e+00 : f32
      %172 = vector.broadcast %cst_74 : f32 to vector<8x128xf32>
      %173 = arith.subf %172, %171 : vector<8x128xf32>
      %174 = arith.select %166, %173, %164 : vector<8x128xi1>, vector<8x128xf32>
      %c1_i32_75 = arith.constant 1 : i32
      %175 = arith.addi %arg4, %c1_i32_75 : i32
      %c10_i32 = arith.constant 10 : i32
      %176 = arith.muli %175, %c10_i32 : i32
      %177 = arith.subf %174, %arg5 : vector<8x128xf32>
      %178 = math.absf %177 : vector<8x128xf32>
      %179 = vector.shape_cast %178 : vector<8x128xf32> to vector<1x8x128xf32>
      %cst_76 = arith.constant dense<0.000000e+00> : vector<1xf32>
      %180 = vector.multi_reduction <add>, %179, %cst_76 [1, 2] : vector<1x8x128xf32> to vector<1xf32>
      %181 = vector.shape_cast %180 : vector<1xf32> to vector<1x1x1xf32>
      %182 = vector.extract %181[0, 0, 0] : f32 from vector<1x1x1xf32>
      %c41_i32 = arith.constant 41 : i32
      %183 = arith.cmpi sgt, %176, %c41_i32 : i32
      %cst_77 = arith.constant 9.99999997E-7 : f32
      %184 = arith.cmpf olt, %182, %cst_77 : f32
      %185 = arith.andi %183, %184 : i1
      %c0_i32_78 = arith.constant 0 : i32
      %c1_i32_79 = arith.constant 1 : i32
      %186 = arith.select %185, %c0_i32_78, %c1_i32_79 : i32
      %c1_i32_80 = arith.constant 1 : i32
      %187 = arith.addi %arg4, %c1_i32_80 : i32
      scf.yield %187, %174, %186 : i32, vector<8x128xf32>, i32
    }
    %c0_3 = arith.constant 0 : index
    %c0_4 = arith.constant 0 : index
    %4 = vector.load %arg3[%c0_3, %c0_4] : memref<8x128xf32, #tpu.memory_space<vmem>>, vector<8x128xf32>
    tpu.vector_store %arg3[%c0_3, %c0_4], %3#1 {strides = array<i32>} : memref<8x128xf32, #tpu.memory_space<vmem>>, vector<8x128xf32>,
    return
  }
  func.func @transform_0(%arg0: i32) -> (i32, i32) {
    %c0_i32 = arith.constant 0 : i32
    %c0_i32_0 = arith.constant 0 : i32
    %c0_i32_1 = arith.constant 0 : i32
    return %c0_i32, %c0_i32_0 : i32, i32
  }
  func.func @transform_1(%arg0: i32) -> (i32, i32) {
    %c0_i32 = arith.constant 0 : i32
    %c0_i32_0 = arith.constant 0 : i32
    %c0_i32_1 = arith.constant 0 : i32
    return %c0_i32, %c0_i32_0 : i32, i32
  }
  func.func @transform_2(%arg0: i32) -> (i32, i32) {
    %c0_i32 = arith.constant 0 : i32
    %c0_i32_0 = arith.constant 0 : i32
    %c0_i32_1 = arith.constant 0 : i32
    return %c0_i32, %c0_i32_0 : i32, i32
  }
}

</mosaic_0001>

<bundles_post_ra>
// kernel: tpu_custom_call.1
= control target key start
LH: loop header
LB: loop body
LE: loop exit
PB: predicated region body
PF: predicated region fallthrough
CT: control target
= control target key end

     0   :  { %7 = vsyncpa [#allocation3], 0  ;;  %s2128_s0 = inlined_call_operand.hbm [shape: f32[128,128], index: 0, kind: input, shape index: {}]   ;;  %s2129_s1 = inlined_call_operand.hbm [shape: f32[8,128], index: 1, kind: input, shape index: {}]   ;;  %s2130_s2 = inlined_call_operand.hbm [shape: f32[8,128], index: 2, kind: output, shape index: {}]  }
   0x1   :  { %8 = vsyncpa [#allocation6], 0 }
   0x2   :  { %9 = vsyncpa [#allocation4], 0  ;;  %s1796_s9 = smov [#allocation2]   ;;  %s1708_s13 = scalar_lea.hbm %s2128_s0, 2048 }
   0x3   :  { %s15_s10 = sshll.u32 %s1796_s9, 4  ;;  %p1709_p0 = scmp.ne.s32.totalorder %s2128_s0, %s1708_s13  ;;  %s16_s10 = int_to_ptr.vmem [resolvable:$true] %s15_s10 }
   0x4   :  { %p1712_p1 = scmp.lt.u32.totalorder %s1708_s13, %s2128_s0 }
   0x6   :  { %p1714_p2 = pnand %p1712_p1, %p1709_p0 }
   0x8   :  { %1717 = shalt.err (!%p1714_p2)
}
   0x9   :  { %s1718_s18 = scalar_lea.vmem %s16_s10, 2048  ;;  %p1723_p4 = scmp.lt.s32.totalorder %s16_s10, %s16_s10 }
   0xa   :  { %p1719_p3 = scmp.ne.s32.totalorder %s16_s10, %s1718_s18  ;;  %p1724_p5 = scmp.lt.s32.totalorder %s1718_s18, %s1718_s18 }
   0xc   :  { %p1725_p6 = por %p1724_p5, %p1723_p4 }
   0xe   :  { %p1726_p7 = pnand %p1725_p6, %p1719_p3 }
  0x10   :  { %1729 = shalt.err (!%p1726_p7)
}
  0x11   :  { %s1797_s19 = smov 128   ;;  %s1798_s20 = smov 8  }
  0x12   :  { %21 = dma.hbm_to_vmem [thread:$0]  %s2128_s0, 2048, %s16_s10, [#allocation3], %s1797_s19, %s1797_s19, %s1798_s20  }
  0x13   :  { %s1799_s23 = smov [#allocation5]   ;;  %s1730_s27 = scalar_lea.hbm %s2129_s1, 128 }
  0x14   :  { %s28_s24 = sshll.u32 %s1799_s23, 4  ;;  %p1731_p8 = scmp.ne.s32.totalorder %s2129_s1, %s1730_s27  ;;  %s29_s24 = int_to_ptr.vmem [resolvable:$true] %s28_s24 }
  0x15   :  { %p1734_p9 = scmp.lt.u32.totalorder %s1730_s27, %s2129_s1 }
  0x17   :  { %p1736_p10 = pnand %p1734_p9, %p1731_p8 }
  0x19   :  { %1739 = shalt.err (!%p1736_p10)
}
  0x1a   :  { %s1740_s4 = scalar_lea.vmem %s29_s24, 128  ;;  %p1745_p12 = scmp.lt.s32.totalorder %s29_s24, %s29_s24 }
  0x1b   :  { %p1741_p11 = scmp.ne.s32.totalorder %s29_s24, %s1740_s4  ;;  %p1746_p13 = scmp.lt.s32.totalorder %s1740_s4, %s1740_s4 }
  0x1d   :  { %p1747_p0 = por %p1746_p13, %p1745_p12 }
  0x1f   :  { %p1748_p1 = pnand %p1747_p0, %p1741_p11 }
  0x21   :  { %1751 = shalt.err (!%p1748_p1)
}
  0x22   :  { %31 = dma.hbm_to_vmem [thread:$0]  %s2129_s1, 128, %s29_s24, [#allocation6]  }
  0x23   :  { %1782 = dma.done.wait [#allocation3], 2048  }
  0x24   :  { %1783 = vsyncadd [#allocation3], 4294965248 }
  0x25   :  { %1784 = dma.done.wait [#allocation6], 128  }
  0x26   :  { %1785 = vsyncadd [#allocation6], 4294967168  ;;  %v1843_v0 = vld [vmem:[#allocation2] sm:$0xff]  ;;  %v1845_v1 = vld [vmem:[#allocation2 + $0x8] sm:$0xff]  ;;  %v1877_v17 = vmov 0.0   ;;  %s1879_s1 = smov 0  }
  0x27   :  { %v1847_v2 = vld [vmem:[#allocation2 + $0x10] sm:$0xff]  ;;  %v1849_v3 = vld [vmem:[#allocation2 + $0x18] sm:$0xff]  ;;  %v1851_v4 = vld [vmem:[#allocation2 + $0x20] sm:$0xff] }
  0x28   :  { %v1853_v5 = vld [vmem:[#allocation2 + $0x28] sm:$0xff]  ;;  %v1855_v6 = vld [vmem:[#allocation2 + $0x30] sm:$0xff]  ;;  %v1857_v7 = vld [vmem:[#allocation2 + $0x38] sm:$0xff] }
  0x29   :  { %v1859_v8 = vld [vmem:[#allocation2 + $0x40] sm:$0xff]  ;;  %v1861_v9 = vld [vmem:[#allocation2 + $0x48] sm:$0xff]  ;;  %v1863_v10 = vld [vmem:[#allocation2 + $0x50] sm:$0xff] }
  0x2a   :  { %v1865_v11 = vld [vmem:[#allocation2 + $0x58] sm:$0xff]  ;;  %v1867_v12 = vld [vmem:[#allocation2 + $0x60] sm:$0xff]  ;;  %v1869_v13 = vld [vmem:[#allocation2 + $0x68] sm:$0xff] }
  0x2b   :  { %v1871_v14 = vld [vmem:[#allocation2 + $0x70] sm:$0xff]  ;;  %v1873_v15 = vld [vmem:[#allocation2 + $0x78] sm:$0xff]  ;;  %v1875_v16 = vld [vmem:[#allocation5] sm:$0xff] }
  0x2c LB: > { %v1889_v18 = vpack.c.bf16 %v1845_v1, %v1843_v0  ;;  %v1800_v19 = vmov 0.0|0.0   ;;  %v1895_v20 = vpack.c.bf16 %v1849_v3, %v1847_v2  ;;  %vm1801_vm0 = vmmov 0   ;;  %s855_s1 = sadd.s32 1, %s1794_s1   ;;  %s1794_s1 = sphi %s1879_s1, %s855_s1   ;;  %v1790_v17 = vphi %v1877_v17, %v2131_v17  }
  0x2d   : > { %1422 = vmatprep.subr.bf16.mxu0 %v1800_v19  ;;  %1446 = vmatprep.subr.bf16.mxu1 %v1800_v19  ;;  %v1802_v21 = vmov 0.0   ;;  %v1908_v22 = vpack.c.bf16 %v1853_v5, %v1851_v4  ;;  %v1916_v23 = vpack.c.bf16 %v1857_v7, %v1855_v6  ;;  %v1924_v24 = vpack.c.bf16 %v1861_v9, %v1859_v8  ;;  %s856_s6 = smul.u32 10, %s855_s1  ;;  %p59_p5 = scmp.lt.s32.totalorder %s855_s1, 15 }
  0x2e   : > { %1424 = vmatpush3.bf16.msra.mxu0 %v1889_v18  ;;  %1104 = vmatprep.mubr.msk.f32.mxu0 %vm1801_vm0, %v1802_v21  ;;  %v1932_v25 = vpack.c.bf16 %v1865_v11, %v1863_v10  ;;  %v1940_v26 = vpack.c.bf16 %v1869_v13, %v1867_v12  ;;  %v1948_v27 = vpack.c.bf16 %v1873_v15, %v1871_v14 }
  0x2f   : > { %1425 = vmatprep.subr.bf16.mxu0 %v1800_v19  ;;  %1448 = vmatpush3.bf16.msra.mxu1 %v1889_v18  ;;  %p868_p2 = scmp.gt.s32.totalorder %s856_s6, 41 }
  0x30   : > { %1139 = vmatprep.mubr.msk.f32.mxu1 %vm1801_vm0, %v1802_v21  ;;  %1449 = vmatprep.subr.bf16.mxu1 %v1800_v19 }
  0x32   : > { %1427 = vmatpush3.bf16.msra.mxu0 %v1895_v20 }
  0x33   : > { %1428 = vmatprep.subr.bf16.mxu0 %v1800_v19  ;;  %1451 = vmatpush3.bf16.msra.mxu1 %v1895_v20 }
  0x34   : > { %1452 = vmatprep.subr.bf16.mxu1 %v1800_v19 }
  0x36   : > { %1430 = vmatpush3.bf16.msra.mxu0 %v1908_v22 }
  0x37   : > { %1431 = vmatprep.subr.bf16.mxu0 %v1800_v19  ;;  %1454 = vmatpush3.bf16.msra.mxu1 %v1908_v22 }
  0x38   : > { %1455 = vmatprep.subr.bf16.mxu1 %v1800_v19 }
  0x3a   : > { %1433 = vmatpush3.bf16.msra.mxu0 %v1916_v23 }
  0x3b   : > { %1434 = vmatprep.subr.bf16.mxu0 %v1800_v19  ;;  %1457 = vmatpush3.bf16.msra.mxu1 %v1916_v23 }
  0x3c   : > { %1458 = vmatprep.subr.bf16.mxu1 %v1800_v19 }
  0x3e   : > { %1436 = vmatpush3.bf16.msra.mxu0 %v1924_v24 }
  0x3f   : > { %1437 = vmatprep.subr.bf16.mxu0 %v1800_v19  ;;  %1460 = vmatpush3.bf16.msra.mxu1 %v1924_v24 }
  0x40   : > { %1461 = vmatprep.subr.bf16.mxu1 %v1800_v19 }
  0x42   : > { %1439 = vmatpush3.bf16.msra.mxu0 %v1932_v25 }
  0x43   : > { %1440 = vmatprep.subr.bf16.mxu0 %v1800_v19  ;;  %1463 = vmatpush3.bf16.msra.mxu1 %v1932_v25 }
  0x44   : > { %1464 = vmatprep.subr.bf16.mxu1 %v1800_v19 }
  0x46   : > { %1442 = vmatpush3.bf16.msra.mxu0 %v1940_v26 }
  0x47   : > { %1443 = vmatprep.subr.bf16.mxu0 %v1800_v19  ;;  %1466 = vmatpush3.bf16.msra.mxu1 %v1940_v26 }
  0x48   : > { %1467 = vmatprep.subr.bf16.mxu1 %v1800_v19 }
  0x4a   : > { %1445 = vmatpush3.bf16.msra.mxu0 %v1948_v27 }
  0x4b   : > { %1470 = vmatprep.subr.bf16.mxu0 %v1800_v19  ;;  %1469 = vmatpush3.bf16.msra.mxu1 %v1948_v27 }
  0x4c   : > { %1494 = vmatprep.subr.bf16.mxu1 %v1800_v19 }
  0x4d   : > { %1105 = vmatmul.mubr.f32.vlgmr.msra.gmra.mrb[0].mxu0 %v1790_v17 }
  0x4e   : > { %1472 = vmatpush3.bf16.msra.mxu0 %v1889_v18  ;;  %1174 = vmatprep.mubr.msk.f32.mxu0 %vm1801_vm0, %v1802_v21 }
  0x4f   : > { %1473 = vmatprep.subr.bf16.mxu0 %v1800_v19 }
  0x52   : > { %1475 = vmatpush3.bf16.msra.mxu0 %v1895_v20 }
  0x53   : > { %1476 = vmatprep.subr.bf16.mxu0 %v1800_v19 }
  0x56   : > { %1478 = vmatpush3.bf16.msra.mxu0 %v1908_v22 }
  0x57   : > { %1479 = vmatprep.subr.bf16.mxu0 %v1800_v19 }
  0x5a   : > { %1481 = vmatpush3.bf16.msra.mxu0 %v1916_v23 }
  0x5b   : > { %1482 = vmatprep.subr.bf16.mxu0 %v1800_v19 }
  0x5e   : > { %1484 = vmatpush3.bf16.msra.mxu0 %v1924_v24 }
  0x5f   : > { %1485 = vmatprep.subr.bf16.mxu0 %v1800_v19 }
  0x62   : > { %1487 = vmatpush3.bf16.msra.mxu0 %v1932_v25 }
  0x63   : > { %1488 = vmatprep.subr.bf16.mxu0 %v1800_v19 }
  0x66   : > { %1490 = vmatpush3.bf16.msra.mxu0 %v1940_v26 }
  0x67   : > { %1491 = vmatprep.subr.bf16.mxu0 %v1800_v19 }
  0x6a   : > { %1493 = vmatpush3.bf16.msra.mxu0 %v1948_v27 }
  0x6b   : > { %1518 = vmatprep.subr.bf16.mxu0 %v1800_v19 }
 0x120   : > { %v131_v28 = vpop.f32.mrb[0].mxu0 }
 0x121   : > { %v132_v29 = vadd.f32 %v131_v28, %v1875_v16  ;;  %v1106_v30 = vpop.f32.mrb[1].mxu0 }
 0x123   : > { %vm135_vm1 = vcmp.lt.f32.partialorder %v132_v29, 0.0  ;;  %v136_v31 = vmul.f32 0.01, %v132_v29 }
 0x125   : > { %v137_v32 = vsel %vm135_vm1, %v136_v31, %v132_v29 }
 0x126   : > { %vm138_vm2 = vcmp.gt.f32.partialorder %v137_v32, 0.5 }
 0x127   : > { %v139_v33 = vsel %vm138_vm2, %v137_v32, 1.0 }
 0x128   : > { %1688 = vrcp.f32 %v139_v33 }
 0x132   : > { %v1689_v34 = vpop.eup %1688 }
 0x133   : > { %v141_v35 = vmul.f32 0.25, %v1689_v34 }
 0x135   : > { %v142_v36 = vsub.f32 1.0, %v141_v35 }
 0x137   : > { %v143_v37 = vsel %vm138_vm2, %v142_v36, %v137_v32 }
 0x138   : > { %1140 = vmatmul.mubr.f32.vlgmr.msra.gmra.mrb[0].mxu1 %v143_v37 }
 0x139   : > { %1496 = vmatpush3.bf16.msra.mxu1 %v1889_v18  ;;  %1209 = vmatprep.mubr.msk.f32.mxu1 %vm1801_vm0, %v1802_v21 }
 0x13a   : > { %1497 = vmatprep.subr.bf16.mxu1 %v1800_v19 }
 0x13d   : > { %1499 = vmatpush3.bf16.msra.mxu1 %v1895_v20 }
 0x13e   : > { %1500 = vmatprep.subr.bf16.mxu1 %v1800_v19 }
 0x141   : > { %1502 = vmatpush3.bf16.msra.mxu1 %v1908_v22 }
 0x142   : > { %1503 = vmatprep.subr.bf16.mxu1 %v1800_v19 }
 0x145   : > { %1505 = vmatpush3.bf16.msra.mxu1 %v1916_v23 }
 0x146   : > { %1506 = vmatprep.subr.bf16.mxu1 %v1800_v19 }
 0x149   : > { %1508 = vmatpush3.bf16.msra.mxu1 %v1924_v24 }
 0x14a   : > { %1509 = vmatprep.subr.bf16.mxu1 %v1800_v19 }
 0x14d   : > { %1511 = vmatpush3.bf16.msra.mxu1 %v1932_v25 }
 0x14e   : > { %1512 = vmatprep.subr.bf16.mxu1 %v1800_v19 }
 0x151   : > { %1514 = vmatpush3.bf16.msra.mxu1 %v1940_v26 }
 0x152   : > { %1515 = vmatprep.subr.bf16.mxu1 %v1800_v19 }
 0x155   : > { %1517 = vmatpush3.bf16.msra.mxu1 %v1948_v27 }
 0x156   : > { %1542 = vmatprep.subr.bf16.mxu1 %v1800_v19 }
 0x20b   : > { %v210_v38 = vpop.f32.mrb[0].mxu1 }
 0x20c   : > { %v211_v39 = vadd.f32 %v210_v38, %v1875_v16  ;;  %v1141_v40 = vpop.f32.mrb[1].mxu1 }
 0x20e   : > { %vm214_vm3 = vcmp.lt.f32.partialorder %v211_v39, 0.0  ;;  %v215_v41 = vmul.f32 0.01, %v211_v39 }
 0x210   : > { %v216_v42 = vsel %vm214_vm3, %v215_v41, %v211_v39 }
 0x211   : > { %vm217_vm4 = vcmp.gt.f32.partialorder %v216_v42, 0.5 }
 0x212   : > { %v218_v43 = vsel %vm217_vm4, %v216_v42, 1.0 }
 0x213   : > { %1690 = vrcp.f32 %v218_v43 }
 0x21d   : > { %v1691_v44 = vpop.eup %1690 }
 0x21e   : > { %v220_v45 = vmul.f32 0.25, %v1691_v44 }
 0x220   : > { %v221_v46 = vsub.f32 1.0, %v220_v45 }
 0x222   : > { %v222_v47 = vsel %vm217_vm4, %v221_v46, %v216_v42 }
 0x223   : > { %1175 = vmatmul.mubr.f32.vlgmr.msra.gmra.mrb[2].mxu0 %v222_v47 }
 0x224   : > { %1520 = vmatpush3.bf16.msra.mxu0 %v1889_v18  ;;  %1244 = vmatprep.mubr.msk.f32.mxu0 %vm1801_vm0, %v1802_v21 }
 0x225   : > { %1521 = vmatprep.subr.bf16.mxu0 %v1800_v19 }
 0x228   : > { %1523 = vmatpush3.bf16.msra.mxu0 %v1895_v20 }
 0x229   : > { %1524 = vmatprep.subr.bf16.mxu0 %v1800_v19 }
 0x22c   : > { %1526 = vmatpush3.bf16.msra.mxu0 %v1908_v22 }
 0x22d   : > { %1527 = vmatprep.subr.bf16.mxu0 %v1800_v19 }
 0x230   : > { %1529 = vmatpush3.bf16.msra.mxu0 %v1916_v23 }
 0x231   : > { %1530 = vmatprep.subr.bf16.mxu0 %v1800_v19 }
 0x234   : > { %1532 = vmatpush3.bf16.msra.mxu0 %v1924_v24 }
 0x235   : > { %1533 = vmatprep.subr.bf16.mxu0 %v1800_v19 }
 0x238   : > { %1535 = vmatpush3.bf16.msra.mxu0 %v1932_v25 }
 0x239   : > { %1536 = vmatprep.subr.bf16.mxu0 %v1800_v19 }
 0x23c   : > { %1538 = vmatpush3.bf16.msra.mxu0 %v1940_v26 }
 0x23d   : > { %1539 = vmatprep.subr.bf16.mxu0 %v1800_v19 }
 0x240   : > { %1541 = vmatpush3.bf16.msra.mxu0 %v1948_v27 }
 0x241   : > { %1566 = vmatprep.subr.bf16.mxu0 %v1800_v19 }
 0x2f6   : > { %v289_v48 = vpop.f32.mrb[2].mxu0 }
 0x2f7   : > { %v290_v49 = vadd.f32 %v289_v48, %v1875_v16  ;;  %v1176_v50 = vpop.f32.mrb[3].mxu0 }
 0x2f9   : > { %vm293_vm5 = vcmp.lt.f32.partialorder %v290_v49, 0.0  ;;  %v294_v51 = vmul.f32 0.01, %v290_v49 }
 0x2fb   : > { %v295_v52 = vsel %vm293_vm5, %v294_v51, %v290_v49 }
 0x2fc   : > { %vm296_vm6 = vcmp.gt.f32.partialorder %v295_v52, 0.5 }
 0x2fd   : > { %v297_v53 = vsel %vm296_vm6, %v295_v52, 1.0 }
 0x2fe   : > { %1692 = vrcp.f32 %v297_v53 }
 0x308   : > { %v1693_v54 = vpop.eup %1692 }
 0x309   : > { %v299_v55 = vmul.f32 0.25, %v1693_v54 }
 0x30b   : > { %v300_v56 = vsub.f32 1.0, %v299_v55 }
 0x30d   : > { %v301_v57 = vsel %vm296_vm6, %v300_v56, %v295_v52 }
 0x30e   : > { %1210 = vmatmul.mubr.f32.vlgmr.msra.gmra.mrb[2].mxu1 %v301_v57 }
 0x30f   : > { %1544 = vmatpush3.bf16.msra.mxu1 %v1889_v18  ;;  %1279 = vmatprep.mubr.msk.f32.mxu1 %vm1801_vm0, %v1802_v21 }
 0x310   : > { %1545 = vmatprep.subr.bf16.mxu1 %v1800_v19 }
 0x313   : > { %1547 = vmatpush3.bf16.msra.mxu1 %v1895_v20 }
 0x314   : > { %1548 = vmatprep.subr.bf16.mxu1 %v1800_v19 }
 0x317   : > { %1550 = vmatpush3.bf16.msra.mxu1 %v1908_v22 }
 0x318   : > { %1551 = vmatprep.subr.bf16.mxu1 %v1800_v19 }
 0x31b   : > { %1553 = vmatpush3.bf16.msra.mxu1 %v1916_v23 }
 0x31c   : > { %1554 = vmatprep.subr.bf16.mxu1 %v1800_v19 }
 0x31f   : > { %1556 = vmatpush3.bf16.msra.mxu1 %v1924_v24 }
 0x320   : > { %1557 = vmatprep.subr.bf16.mxu1 %v1800_v19 }
 0x323   : > { %1559 = vmatpush3.bf16.msra.mxu1 %v1932_v25 }
 0x324   : > { %1560 = vmatprep.subr.bf16.mxu1 %v1800_v19 }
 0x327   : > { %1562 = vmatpush3.bf16.msra.mxu1 %v1940_v26 }
 0x328   : > { %1563 = vmatprep.subr.bf16.mxu1 %v1800_v19 }
 0x32b   : > { %1565 = vmatpush3.bf16.msra.mxu1 %v1948_v27 }
 0x32c   : > { %1590 = vmatprep.subr.bf16.mxu1 %v1800_v19 }
 0x3e1   : > { %v368_v58 = vpop.f32.mrb[2].mxu1 }
 0x3e2   : > { %v369_v59 = vadd.f32 %v368_v58, %v1875_v16  ;;  %v1211_v60 = vpop.f32.mrb[3].mxu1 }
 0x3e4   : > { %vm372_vm7 = vcmp.lt.f32.partialorder %v369_v59, 0.0  ;;  %v373_v61 = vmul.f32 0.01, %v369_v59 }
 0x3e6   : > { %v374_v62 = vsel %vm372_vm7, %v373_v61, %v369_v59 }
 0x3e7   : > { %vm375_vm8 = vcmp.gt.f32.partialorder %v374_v62, 0.5 }
 0x3e8   : > { %v376_v63 = vsel %vm375_vm8, %v374_v62, 1.0 }
 0x3e9   : > { %1694 = vrcp.f32 %v376_v63 }
 0x3f3   : > { %v1695_v28 = vpop.eup %1694 }
 0x3f4   : > { %v378_v29 = vmul.f32 0.25, %v1695_v28 }
 0x3f6   : > { %v379_v30 = vsub.f32 1.0, %v378_v29 }
 0x3f8   : > { %v380_v31 = vsel %vm375_vm8, %v379_v30, %v374_v62 }
 0x3f9   : > { %1245 = vmatmul.mubr.f32.vlgmr.msra.gmra.mrb[4].mxu0 %v380_v31 }
 0x3fa   : > { %1568 = vmatpush3.bf16.msra.mxu0 %v1889_v18  ;;  %1314 = vmatprep.mubr.msk.f32.mxu0 %vm1801_vm0, %v1802_v21 }
 0x3fb   : > { %1569 = vmatprep.subr.bf16.mxu0 %v1800_v19 }
 0x3fe   : > { %1571 = vmatpush3.bf16.msra.mxu0 %v1895_v20 }
 0x3ff   : > { %1572 = vmatprep.subr.bf16.mxu0 %v1800_v19 }
 0x402   : > { %1574 = vmatpush3.bf16.msra.mxu0 %v1908_v22 }
 0x403   : > { %1575 = vmatprep.subr.bf16.mxu0 %v1800_v19 }
 0x406   : > { %1577 = vmatpush3.bf16.msra.mxu0 %v1916_v23 }
 0x407   : > { %1578 = vmatprep.subr.bf16.mxu0 %v1800_v19 }
 0x40a   : > { %1580 = vmatpush3.bf16.msra.mxu0 %v1924_v24 }
 0x40b   : > { %1581 = vmatprep.subr.bf16.mxu0 %v1800_v19 }
 0x40e   : > { %1583 = vmatpush3.bf16.msra.mxu0 %v1932_v25 }
 0x40f   : > { %1584 = vmatprep.subr.bf16.mxu0 %v1800_v19 }
 0x412   : > { %1586 = vmatpush3.bf16.msra.mxu0 %v1940_v26 }
 0x413   : > { %1587 = vmatprep.subr.bf16.mxu0 %v1800_v19 }
 0x416   : > { %1589 = vmatpush3.bf16.msra.mxu0 %v1948_v27 }
 0x417   : > { %1614 = vmatprep.subr.bf16.mxu0 %v1800_v19 }
 0x4cc   : > { %v447_v32 = vpop.f32.mrb[4].mxu0 }
 0x4cd   : > { %v448_v33 = vadd.f32 %v447_v32, %v1875_v16  ;;  %v1246_v34 = vpop.f32.mrb[5].mxu0 }
 0x4cf   : > { %vm451_vm9 = vcmp.lt.f32.partialorder %v448_v33, 0.0  ;;  %v452_v35 = vmul.f32 0.01, %v448_v33 }
 0x4d1   : > { %v453_v36 = vsel %vm451_vm9, %v452_v35, %v448_v33 }
 0x4d2   : > { %vm454_vm10 = vcmp.gt.f32.partialorder %v453_v36, 0.5 }
 0x4d3   : > { %v455_v37 = vsel %vm454_vm10, %v453_v36, 1.0 }
 0x4d4   : > { %1696 = vrcp.f32 %v455_v37 }
 0x4de   : > { %v1697_v38 = vpop.eup %1696 }
 0x4df   : > { %v457_v39 = vmul.f32 0.25, %v1697_v38 }
 0x4e1   : > { %v458_v40 = vsub.f32 1.0, %v457_v39 }
 0x4e3   : > { %v459_v41 = vsel %vm454_vm10, %v458_v40, %v453_v36 }
 0x4e4   : > { %1280 = vmatmul.mubr.f32.vlgmr.msra.gmra.mrb[4].mxu1 %v459_v41 }
 0x4e5   : > { %1592 = vmatpush3.bf16.msra.mxu1 %v1889_v18  ;;  %1349 = vmatprep.mubr.msk.f32.mxu1 %vm1801_vm0, %v1802_v21 }
 0x4e6   : > { %1593 = vmatprep.subr.bf16.mxu1 %v1800_v19 }
 0x4e9   : > { %1595 = vmatpush3.bf16.msra.mxu1 %v1895_v20 }
 0x4ea   : > { %1596 = vmatprep.subr.bf16.mxu1 %v1800_v19 }
 0x4ed   : > { %1598 = vmatpush3.bf16.msra.mxu1 %v1908_v22 }
 0x4ee   : > { %1599 = vmatprep.subr.bf16.mxu1 %v1800_v19 }
 0x4f1   : > { %1601 = vmatpush3.bf16.msra.mxu1 %v1916_v23 }
 0x4f2   : > { %1602 = vmatprep.subr.bf16.mxu1 %v1800_v19 }
 0x4f5   : > { %1604 = vmatpush3.bf16.msra.mxu1 %v1924_v24 }
 0x4f6   : > { %1605 = vmatprep.subr.bf16.mxu1 %v1800_v19 }
 0x4f9   : > { %1607 = vmatpush3.bf16.msra.mxu1 %v1932_v25 }
 0x4fa   : > { %1608 = vmatprep.subr.bf16.mxu1 %v1800_v19 }
 0x4fd   : > { %1610 = vmatpush3.bf16.msra.mxu1 %v1940_v26 }
 0x4fe   : > { %1611 = vmatprep.subr.bf16.mxu1 %v1800_v19 }
 0x501   : > { %1613 = vmatpush3.bf16.msra.mxu1 %v1948_v27 }
 0x502   : > { %1638 = vmatprep.subr.bf16.mxu1 %v1800_v19 }
 0x5b7   : > { %v526_v42 = vpop.f32.mrb[4].mxu1 }
 0x5b8   : > { %v527_v43 = vadd.f32 %v526_v42, %v1875_v16  ;;  %v1281_v44 = vpop.f32.mrb[5].mxu1 }
 0x5ba   : > { %vm530_vm11 = vcmp.lt.f32.partialorder %v527_v43, 0.0  ;;  %v531_v45 = vmul.f32 0.01, %v527_v43 }
 0x5bc   : > { %v532_v46 = vsel %vm530_vm11, %v531_v45, %v527_v43 }
 0x5bd   : > { %vm533_vm12 = vcmp.gt.f32.partialorder %v532_v46, 0.5 }
 0x5be   : > { %v534_v47 = vsel %vm533_vm12, %v532_v46, 1.0 }
 0x5bf   : > { %1698 = vrcp.f32 %v534_v47 }
 0x5c9   : > { %v1699_v48 = vpop.eup %1698 }
 0x5ca   : > { %v536_v49 = vmul.f32 0.25, %v1699_v48 }
 0x5cc   : > { %v537_v50 = vsub.f32 1.0, %v536_v49 }
 0x5ce   : > { %v538_v51 = vsel %vm533_vm12, %v537_v50, %v532_v46 }
 0x5cf   : > { %1315 = vmatmul.mubr.f32.vlgmr.msra.gmra.mrb[6].mxu0 %v538_v51 }
 0x5d0   : > { %1616 = vmatpush3.bf16.msra.mxu0 %v1889_v18  ;;  %1384 = vmatprep.mubr.msk.f32.mxu0 %vm1801_vm0, %v1802_v21 }
 0x5d1   : > { %1617 = vmatprep.subr.bf16.mxu0 %v1800_v19 }
 0x5d4   : > { %1619 = vmatpush3.bf16.msra.mxu0 %v1895_v20 }
 0x5d5   : > { %1620 = vmatprep.subr.bf16.mxu0 %v1800_v19 }
 0x5d8   : > { %1622 = vmatpush3.bf16.msra.mxu0 %v1908_v22 }
 0x5d9   : > { %1623 = vmatprep.subr.bf16.mxu0 %v1800_v19 }
 0x5dc   : > { %1625 = vmatpush3.bf16.msra.mxu0 %v1916_v23 }
 0x5dd   : > { %1626 = vmatprep.subr.bf16.mxu0 %v1800_v19 }
 0x5e0   : > { %1628 = vmatpush3.bf16.msra.mxu0 %v1924_v24 }
 0x5e1   : > { %1629 = vmatprep.subr.bf16.mxu0 %v1800_v19 }
 0x5e4   : > { %1631 = vmatpush3.bf16.msra.mxu0 %v1932_v25 }
 0x5e5   : > { %1632 = vmatprep.subr.bf16.mxu0 %v1800_v19 }
 0x5e8   : > { %1634 = vmatpush3.bf16.msra.mxu0 %v1940_v26 }
 0x5e9   : > { %1635 = vmatprep.subr.bf16.mxu0 %v1800_v19 }
 0x5ec   : > { %1637 = vmatpush3.bf16.msra.mxu0 %v1948_v27 }
 0x6a2   : > { %v605_v52 = vpop.f32.mrb[6].mxu0 }
 0x6a3   : > { %v606_v53 = vadd.f32 %v605_v52, %v1875_v16  ;;  %v1316_v54 = vpop.f32.mrb[7].mxu0 }
 0x6a5   : > { %vm609_vm13 = vcmp.lt.f32.partialorder %v606_v53, 0.0  ;;  %v610_v55 = vmul.f32 0.01, %v606_v53 }
 0x6a7   : > { %v611_v56 = vsel %vm609_vm13, %v610_v55, %v606_v53 }
 0x6a8   : > { %vm612_vm14 = vcmp.gt.f32.partialorder %v611_v56, 0.5 }
 0x6a9   : > { %v613_v57 = vsel %vm612_vm14, %v611_v56, 1.0 }
 0x6aa   : > { %1700 = vrcp.f32 %v613_v57 }
 0x6b4   : > { %v1701_v58 = vpop.eup %1700 }
 0x6b5   : > { %v615_v59 = vmul.f32 0.25, %v1701_v58 }
 0x6b7   : > { %v616_v60 = vsub.f32 1.0, %v615_v59 }
 0x6b9   : > { %v617_v61 = vsel %vm612_vm14, %v616_v60, %v611_v56 }
 0x6ba   : > { %1350 = vmatmul.mubr.f32.vlgmr.msra.gmra.mrb[6].mxu1 %v617_v61 }
 0x6bb   : > { %1640 = vmatpush3.bf16.msra.mxu1 %v1889_v18  ;;  %1419 = vmatprep.mubr.msk.f32.mxu1 %vm1801_vm0, %v1802_v21 }
 0x6bc   : > { %1641 = vmatprep.subr.bf16.mxu1 %v1800_v19 }
 0x6bf   : > { %1643 = vmatpush3.bf16.msra.mxu1 %v1895_v20 }
 0x6c0   : > { %1644 = vmatprep.subr.bf16.mxu1 %v1800_v19 }
 0x6c3   : > { %1646 = vmatpush3.bf16.msra.mxu1 %v1908_v22 }
 0x6c4   : > { %1647 = vmatprep.subr.bf16.mxu1 %v1800_v19 }
 0x6c7   : > { %1649 = vmatpush3.bf16.msra.mxu1 %v1916_v23 }
 0x6c8   : > { %1650 = vmatprep.subr.bf16.mxu1 %v1800_v19 }
 0x6cb   : > { %1652 = vmatpush3.bf16.msra.mxu1 %v1924_v24 }
 0x6cc   : > { %1653 = vmatprep.subr.bf16.mxu1 %v1800_v19 }
 0x6cf   : > { %1655 = vmatpush3.bf16.msra.mxu1 %v1932_v25 }
 0x6d0   : > { %1656 = vmatprep.subr.bf16.mxu1 %v1800_v19 }
 0x6d3   : > { %1658 = vmatpush3.bf16.msra.mxu1 %v1940_v26 }
 0x6d4   : > { %1659 = vmatprep.subr.bf16.mxu1 %v1800_v19 }
 0x6d7   : > { %1661 = vmatpush3.bf16.msra.mxu1 %v1948_v27 }
 0x78d   : > { %v684_v18 = vpop.f32.mrb[6].mxu1 }
 0x78e   : > { %v685_v20 = vadd.f32 %v684_v18, %v1875_v16  ;;  %v1351_v21 = vpop.f32.mrb[7].mxu1 }
 0x790   : > { %vm688_vm15 = vcmp.lt.f32.partialorder %v685_v20, 0.0  ;;  %v689_v22 = vmul.f32 0.01, %v685_v20 }
 0x792   : > { %v690_v23 = vsel %vm688_vm15, %v689_v22, %v685_v20 }
 0x793   : > { %vm691_vm0 = vcmp.gt.f32.partialorder %v690_v23, 0.5 }
 0x794   : > { %v692_v24 = vsel %vm691_vm0, %v690_v23, 1.0 }
 0x795   : > { %1702 = vrcp.f32 %v692_v24 }
 0x79f   : > { %v1703_v62 = vpop.eup %1702 }
 0x7a0   : > { %v694_v25 = vmul.f32 0.25, %v1703_v62 }
 0x7a2   : > { %v695_v63 = vsub.f32 1.0, %v694_v25 }
 0x7a4   : > { %v696_v28 = vsel %vm691_vm0, %v695_v63, %v690_v23 }
 0x7a5   : > { %1385 = vmatmul.mubr.f32.vlgmr.msra.gmra.mrb[8].mxu0 %v696_v28 }
 0x878   : > { %v763_v26 = vpop.f32.mrb[8].mxu0 }
 0x879   : > { %v764_v19 = vadd.f32 %v763_v26, %v1875_v16  ;;  %v1386_v29 = vpop.f32.mrb[9].mxu0 }
 0x87b   : > { %vm767_vm1 = vcmp.lt.f32.partialorder %v764_v19, 0.0  ;;  %v768_v27 = vmul.f32 0.01, %v764_v19 }
 0x87d   : > { %v769_v30 = vsel %vm767_vm1, %v768_v27, %v764_v19 }
 0x87e   : > { %vm770_vm2 = vcmp.gt.f32.partialorder %v769_v30, 0.5 }
 0x87f   : > { %v771_v31 = vsel %vm770_vm2, %v769_v30, 1.0 }
 0x880   : > { %1704 = vrcp.f32 %v771_v31 }
 0x88a   : > { %v1705_v32 = vpop.eup %1704 }
 0x88b   : > { %v773_v33 = vmul.f32 0.25, %v1705_v32 }
 0x88d   : > { %v774_v34 = vsub.f32 1.0, %v773_v33 }
 0x88f   : > { %v775_v35 = vsel %vm770_vm2, %v774_v34, %v769_v30 }
 0x890   : > { %1420 = vmatmul.mubr.f32.vlgmr.msra.gmra.mrb[8].mxu1 %v775_v35 }
 0x963   : > { %v842_v36 = vpop.f32.mrb[8].mxu1 }
 0x964   : > { %v843_v37 = vadd.f32 %v842_v36, %v1875_v16  ;;  %v1421_v38 = vpop.f32.mrb[9].mxu1 }
 0x966   : > { %vm846_vm3 = vcmp.lt.f32.partialorder %v843_v37, 0.0  ;;  %v847_v39 = vmul.f32 0.01, %v843_v37 }
 0x968   : > { %v848_v40 = vsel %vm846_vm3, %v847_v39, %v843_v37 }
 0x969   : > { %vm849_vm4 = vcmp.gt.f32.partialorder %v848_v40, 0.5 }
 0x96a   : > { %v850_v41 = vsel %vm849_vm4, %v848_v40, 1.0 }
 0x96b   : > { %1706 = vrcp.f32 %v850_v41 }
 0x975   : > { %v1707_v42 = vpop.eup %1706 }
 0x976   : > { %v852_v43 = vmul.f32 0.25, %v1707_v42 }
 0x978   : > { %v853_v44 = vsub.f32 1.0, %v852_v43 }
 0x97a   : > { %v854_v45 = vsel %vm849_vm4, %v853_v44, %v848_v40  }
 0x97b   : > { %v857_v46 = vsub.f32 %v854_v45, %v1790_v17  ;;  %v2131_v17 = vmov %v854_v45 }
 0x97d   : > { %v858_v47 = vand.u32 2147483647, %v857_v46 }
 0x97f   : > { %859 = vadd.xlane.f32.xlu0 %v858_v47 }
 0xa0c   : > { %v860_v48 = vpop.xlane.xlu0 %859 }
 0xa0d   : > { %v861_v49 = vrot.slane %v860_v48, 4 }
 0xa0f   : > { %v862_v50 = vadd.f32 %v861_v49, %v860_v48 }
 0xa11   : > { %v863_v51 = vrot.slane %v862_v50, 2 }
 0xa13   : > { %v864_v52 = vadd.f32 %v863_v51, %v862_v50 }
 0xa15   : > { %v865_v53 = vrot.slane %v864_v52, 1 }
 0xa17   : > { %v866_v54 = vadd.f32 %v865_v53, %v864_v52 }
 0xa19   : > { %1662 = vpush %v866_v54 }
 0xa4a   : > { %s1663_s7 = spop %1662 }
 0xa4b   : > { %p869_p3 = scmp.lt.f32.partialorder %s1663_s7, 1e-06 }
 0xa4d   : > { %p870_p4 = pnand %p869_p3, %p868_p2 }
 0xa4f   : > { %p61_p6 = pnand %p870_p4, %p59_p5 }
 0xa50   :  { %874 = vst [vmem:[#allocation7] sm:$0xff] (%p61_p6), %v854_v45  ;;  %s1803_s8 = smov (%p61_p6), [#allocation7]  }
 0xa51   :  { %64 = sbr.rel (!%p61_p6) target bundleno = 44 (0x2c), region = 43  ;;  %s881_s9 = sshll.u32 (%p61_p6), %s1803_s8, 4  ;;  %s882_s9 = int_to_ptr.vmem [resolvable:$true] %s881_s9 }
 0xa52   :  { %s1752_s10 = scalar_lea.vmem (%p61_p6), %s882_s9, 128  ;;  %p1757_p8 = scmp.lt.s32.totalorder (%p61_p6), %s882_s9, %s882_s9 }
 0xa53   :  { %p1753_p7 = scmp.ne.s32.totalorder (%p61_p6), %s882_s9, %s1752_s10  ;;  %p1758_p9 = scmp.lt.s32.totalorder (%p61_p6), %s1752_s10, %s1752_s10 }
 0xa55   :  { %p1759_p10 = por (%p61_p6), %p1758_p9, %p1757_p8 }
 0xa57   :  { %p1760_p11 = pnand (%p61_p6), %p1759_p10, %p1753_p7 }
 0xa59   :  { %1763 = shalt.err (!%p1760_p11)
}
 0xa5a   :  { %s1764_s13 = scalar_lea.hbm %s2130_s2, 128 }
 0xa5b   :  { %p1765_p12 = scmp.ne.s32.totalorder %s2130_s2, %s1764_s13  ;;  %p1768_p13 = scmp.lt.u32.totalorder %s1764_s13, %s2130_s2 }
 0xa5d   :  { %p1770_p0 = pnand %p1768_p13, %p1765_p12 }
 0xa5f   :  { %1773 = shalt.err (!%p1770_p0)
}
 0xa60   :  { %884 = dma.vmem_to_hbm [thread:$0]  %s882_s9, 128, %s2130_s2, [#allocation4]  }
 0xa61   :  { %1786 = dma.done.wait [#allocation4], 128  }
 0xa62   :  { %1787 = vsyncadd [#allocation4], 4294967168 }
 0xa63   :  { %888 = vsyncpa [#allocation3], 1 }
 0xa64   :  { %889 = vsyncpa [#allocation6], 1 }
 0xa65   :  { %890 = vsyncpa [#allocation4], 1 }

</bundles_post_ra>
